<compile_context>
chip_gen: v5e
topology: v5e:2x2
jax: 0.10.0
libtpu: 0.0.40
codegen_flags: <defaults>
</compile_context>

<pallas_src>
import math

import jax
import jax.numpy as jnp
from jax.experimental import pallas as pl
from jax.experimental.pallas import tpu as pltpu


def _column_parallel_matmul_kernel(x_ref, w_ref, o_ref, acc_ref):
    # x_ref  : [tm, tk]  activation tile (compute dtype, e.g. bf16)
    # w_ref  : [tk, tn]  K-major weight tile of the current rank (leading
    #                    world_size axis squeezed away by the BlockSpec)
    # o_ref  : [tm, tn]  output tile == column slice of the all-gathered output
    # acc_ref: [tm, tn]  f32 accumulator, resident across the K grid axis
    k = pl.program_id(3)

    @pl.when(k == 0)
    def _init():
        acc_ref[...] = jnp.zeros_like(acc_ref)

    acc_ref[...] += jnp.dot(
        x_ref[...], w_ref[...], preferred_element_type=jnp.float32
    )

    @pl.when(k == pl.num_programs(3) - 1)
    def _store():
        o_ref[...] = acc_ref[...].astype(o_ref.dtype)


def _pick_tile(dim, candidates):
    """Largest candidate that evenly divides `dim`; fall back to the full dim."""
    for c in candidates:
        if c <= dim and dim % c == 0:
            return c
    return dim


def column_parallel_linear(x, shard_weights, *, compute_dtype=jnp.bfloat16,
                           out_dtype=None):
    """x: [B, in_features]; shard_weights: [world_size, out_per_shard, in_features].

    Returns [B, world_size * out_per_shard] == x @ concat(shard_weights, 0).T
    (i.e. the result of the per-rank shard matmul followed by all_gather along dim 1).
    """
    B, in_features = x.shape
    world_size, out_per_shard, in_features_w = shard_weights.shape
    assert in_features == in_features_w
    out_features = world_size * out_per_shard
    out_dtype = out_dtype if out_dtype is not None else x.dtype

    # Lane-dense, unmasked output stores require 128-aligned shard width.
    assert out_per_shard % 128 == 0, (
        "out_per_shard must be a multiple of 128 for unmasked lane-dense stores"
    )

    # bf16 operands feed the MXU at peak; accumulation stays f32.
    x_c = x.astype(compute_dtype)
    # One-time K-major weight layout (done by XLA outside the kernel): avoids an
    # in-kernel transpose and puts out_per_shard on the lane axis.
    w_km = jnp.swapaxes(shard_weights, 1, 2).astype(compute_dtype)  # [ws, K, N]

    # Tile sizes: big enough to amortize per-step DMA overhead and keep the MXU
    # busy, small enough (a few MiB double-buffered) to fit v7x's 64 MiB VMEM as
    # well as v6e/v5e's 128 MiB without touching vmem_limit_bytes.
    tm = _pick_tile(B, (256, 128, 64, 32, 16, 8))
    tn = _pick_tile(out_per_shard, (512, 256, 128))
    tk = _pick_tile(in_features, (1024, 512, 256, 128))

    gm = B // tm
    gn = out_per_shard // tn
    gk = in_features // tk
    grid = (world_size, gm, gn, gk)  # reduction (K) axis last

    in_item = jnp.dtype(compute_dtype).itemsize
    out_item = jnp.dtype(out_dtype).itemsize
    cost = pl.CostEstimate(
        flops=2 * B * in_features * out_features,
        transcendentals=0,
        bytes_accessed=(B * in_features * in_item
                        + world_size * out_per_shard * in_features * in_item
                        + B * out_features * out_item),
    )

    return pl.pallas_call(
        _column_parallel_matmul_kernel,
        out_shape=jax.ShapeDtypeStruct((B, out_features), out_dtype),
        grid_spec=pltpu.PrefetchScalarGridSpec(
            num_scalar_prefetch=0,
            grid=grid,
            in_specs=[
                # x tile: index_map constant in (r, j) -> no redundant re-DMA of
                # activations across ranks / N tiles.
                pl.BlockSpec((tm, tk), lambda r, i, j, k: (i, k)),
                # Streamed operand: rank r's K-major weight tile.
                # (If profiling shows exposed DMA, add pipeline_mode=pl.Buffered(3).)
                pl.BlockSpec(
                    (pl.Squeezed(), tk, tn),
                    lambda r, i, j, k: (r, k, j),
                ),
            ],
            # Rank r, N-tile j lands at column block r*gn + j — exactly the
            # concatenation order all_gather(dim=1) would produce.
            out_specs=pl.BlockSpec((tm, tn), lambda r, i, j, k: (i, r * gn + j)),
            scratch_shapes=[pltpu.VMEM((tm, tn), jnp.float32)],
        ),
        compiler_params=pltpu.CompilerParams(
            dimension_semantics=("parallel", "parallel", "parallel", "arbitrary"),
        ),
        cost_estimate=cost,
    )(x_c, w_km)


def init_shard_weights(key, world_size, out_features, in_features, dtype=jnp.float32):
    """Deterministic stand-in for nn.init.kaiming_uniform_(a=sqrt(5)):
    uniform(-1/sqrt(fan_in), 1/sqrt(fan_in)) with fan_in = in_features."""
    assert out_features % world_size == 0
    out_per_shard = out_features // world_size
    bound = 1.0 / math.sqrt(in_features)
    full = jax.random.uniform(
        key, (out_features, in_features), dtype=dtype, minval=-bound, maxval=bound
    )
    return full.reshape(world_size, out_per_shard, in_features)


if __name__ == "__main__":
    # Small but MXU-friendly shapes: batch tile fills the MXU rows, feature dims
    # are multiples of 128, out_per_shard is 128-aligned.
    batch = 128
    in_features = 256
    out_features = 512
    world_size = 2  # simulated tensor-parallel world size

    key = jax.random.PRNGKey(0)
    kx, kw = jax.random.split(key)

    x = jax.random.normal(kx, (batch, in_features), dtype=jnp.float32)
    shard_weights = init_shard_weights(kw, world_size, out_features, in_features)

    out = column_parallel_linear(x, shard_weights)
    out = jax.block_until_ready(out)

    # Reference: x @ concat(shards, 0).T with the same bf16 operand rounding
    # (accumulation in f32 on both paths).
    x_b = x.astype(jnp.bfloat16).astype(jnp.float32)
    w_b = (shard_weights.reshape(out_features, in_features)
           .astype(jnp.bfloat16).astype(jnp.float32))
    ref = x_b @ w_b.T

    assert out.shape == (batch, out_features)
    assert out.dtype == x.dtype
    assert jnp.allclose(out, ref, atol=1e-2, rtol=1e-2), float(
        jnp.max(jnp.abs(out - ref))
    )

    # TODO(synk): backward (grad split per rank), update_weights and
    # gather_weights are training/comm utilities, not part of the forward path.
    print("KERNEL_OK")
</pallas_src>

<mosaic_0001>
module attributes {stable_mosaic.version = 11 : i64} {
  func.func @_column_parallel_matmul_kernel(%arg0: i32, %arg1: i32, %arg2: i32, %arg3: i32, %arg4: memref<128x256xbf16, #tpu.memory_space<vmem>>, %arg5: memref<1x256x256xbf16, #tpu.memory_space<vmem>>, %arg6: memref<128x256xf32, #tpu.memory_space<vmem>>, %arg7: memref<128x256xf32, #tpu.memory_space<vmem>>) attributes {dimension_semantics = [#tpu.dimension_semantics<parallel>, #tpu.dimension_semantics<parallel>, #tpu.dimension_semantics<parallel>, #tpu.dimension_semantics<arbitrary>], iteration_bounds = array<i64: 2, 1, 1, 1>, scalar_prefetch = 0 : i64, scratch_operands = 1 : i64, tpu.core_type = #tpu.core_type<tc>, window_params = [{transform_indices = @transform_0, window_bounds = array<i64: 128, 256>}, {transform_indices = @transform_1, window_bounds = array<i64: 1, 256, 256>}, {transform_indices = @transform_2, window_bounds = array<i64: 128, 256>}]} {
    %c0_i32 = arith.constant 0 : i32
    %0 = arith.cmpi eq, %arg3, %c0_i32 : i32
    %1 = arith.extui %0 : i1 to i32
    %c0_i32_0 = arith.constant 0 : i32
    %2 = arith.cmpi ne, %1, %c0_i32_0 : i32
    scf.if %2 {
      %cst_11 = arith.constant 0.000000e+00 : f32
      %13 = vector.broadcast %cst_11 : f32 to vector<128x256xf32>
      %c0_12 = arith.constant 0 : index
      %c0_13 = arith.constant 0 : index
      %14 = vector.load %arg7[%c0_12, %c0_13] : memref<128x256xf32, #tpu.memory_space<vmem>>, vector<128x256xf32>
      tpu.vector_store %arg7[%c0_12, %c0_13], %13 {strides = array<i32>} : memref<128x256xf32, #tpu.memory_space<vmem>>, vector<128x256xf32>,
    } else {
    }
    %c0 = arith.constant 0 : index
    %c0_1 = arith.constant 0 : index
    %3 = vector.load %arg7[%c0, %c0_1] : memref<128x256xf32, #tpu.memory_space<vmem>>, vector<128x256xf32>
    %c0_2 = arith.constant 0 : index
    %c0_3 = arith.constant 0 : index
    %4 = vector.load %arg4[%c0_2, %c0_3] : memref<128x256xbf16, #tpu.memory_space<vmem>>, vector<128x256xbf16>
    %c0_4 = arith.constant 0 : index
    %c0_5 = arith.constant 0 : index
    %c0_6 = arith.constant 0 : index
    %5 = vector.load %arg5[%c0_4, %c0_5, %c0_6] : memref<1x256x256xbf16, #tpu.memory_space<vmem>>, vector<1x256x256xbf16>
    %6 = vector.shape_cast %5 : vector<1x256x256xbf16> to vector<256x256xbf16>
    %cst = arith.constant dense<0.000000e+00> : vector<128x256xf32>
    %7 = tpu.matmul %4, %6, %cst {dimension_numbers = #tpu.dot_dimension_numbers<[1], [0], [0], [1], [0, 0, 1, 1], [], []>} : vector<128x256xbf16>, vector<256x256xbf16>, vector<128x256xf32> -> vector<128x256xf32>
    %8 = arith.addf %3, %7 : vector<128x256xf32>
    %c0_7 = arith.constant 0 : index
    %c0_8 = arith.constant 0 : index
    %9 = vector.load %arg7[%c0_7, %c0_8] : memref<128x256xf32, #tpu.memory_space<vmem>>, vector<128x256xf32>
    tpu.vector_store %arg7[%c0_7, %c0_8], %8 {strides = array<i32>} : memref<128x256xf32, #tpu.memory_space<vmem>>, vector<128x256xf32>,
    %c0_i32_9 = arith.constant 0 : i32
    %10 = arith.cmpi eq, %arg3, %c0_i32_9 : i32
    %11 = arith.extui %10 : i1 to i32
    %c0_i32_10 = arith.constant 0 : i32
    %12 = arith.cmpi ne, %11, %c0_i32_10 : i32
    scf.if %12 {
      %c0_11 = arith.constant 0 : index
      %c0_12 = arith.constant 0 : index
      %13 = vector.load %arg7[%c0_11, %c0_12] : memref<128x256xf32, #tpu.memory_space<vmem>>, vector<128x256xf32>
      %c0_13 = arith.constant 0 : index
      %c0_14 = arith.constant 0 : index
      %14 = vector.load %arg6[%c0_13, %c0_14] : memref<128x256xf32, #tpu.memory_space<vmem>>, vector<128x256xf32>
      tpu.vector_store %arg6[%c0_13, %c0_14], %13 {strides = array<i32>} : memref<128x256xf32, #tpu.memory_space<vmem>>, vector<128x256xf32>,
    } else {
    }
    return
  }
  func.func @transform_0(%arg0: i32, %arg1: i32, %arg2: i32, %arg3: i32) -> (i32, i32) {
    %c0_i32 = arith.constant 0 : i32
    return %arg1, %arg3 : i32, i32
  }
  func.func @transform_1(%arg0: i32, %arg1: i32, %arg2: i32, %arg3: i32) -> (i32, i32, i32) {
    %c0_i32 = arith.constant 0 : i32
    return %arg0, %arg3, %arg2 : i32, i32, i32
  }
  func.func @transform_2(%arg0: i32, %arg1: i32, %arg2: i32, %arg3: i32) -> (i32, i32) {
    %c1_i32 = arith.constant 1 : i32
    %0 = arith.muli %arg0, %c1_i32 : i32
    %1 = arith.addi %0, %arg2 : i32
    %c0_i32 = arith.constant 0 : i32
    return %arg1, %1 : i32, i32
  }
}

</mosaic_0001>

<bundles_post_ra>
// kernel: tpu_custom_call.1
= control target key start
LH: loop header
LB: loop body
LE: loop exit
PB: predicated region body
PF: predicated region fallthrough
CT: control target
= control target key end

     0   :  { %7 = vsyncpa [#allocation4], 0  ;;  %s1822_s0 = inlined_call_operand.hbm [shape: bf16[128,256], index: 0, kind: input, shape index: {}]   ;;  %s1823_s1 = inlined_call_operand.hbm [shape: bf16[2,256,256], index: 1, kind: input, shape index: {}]   ;;  %s1824_s2 = inlined_call_operand.hbm [shape: f32[128,512], index: 2, kind: output, shape index: {}]  }
   0x1   :  { %8 = vsyncpa [#allocation7], 0 }
   0x2   :  { %10 = vsyncpa [#allocation7 + $0x1], 0 }
   0x3   :  { %11 = vsyncpa [#allocation5], 0 }
   0x4   :  { %13 = vsyncpa [#allocation5 + $0x1], 0  ;;  %s1562_s9 = smov 0   ;;  %s1564_s10 = smov 0  }
   0x5   :  { %s1566_s11 = smov 0   ;;  %s1568_s12 = smov 0  }
   0x6   :  { %s1570_s13 = smov 0   ;;  %s1572_s14 = smov 0  }
   0x7 LB: > { %s1056_s15 = sadd.s32 4294967295, %s1539_s14   ;;  %s1057_s16 = sadd.s32 4294967294, %s1539_s14   ;;  %s1539_s14 = sphi %s1572_s14, %s19_s14   ;;  %s1535_s13 = sphi %s1570_s13, %s1836_s13   ;;  %s1531_s12 = sphi %s1568_s12, %s1835_s12   ;;  %s1527_s11 = sphi %s1566_s11, %s1834_s11   ;;  %s1523_s10 = sphi %s1564_s10, %s1833_s10   ;;  %s1519_s9 = sphi %s1562_s9, %s1832_s9  }
   0x8   : > { %p97_p0 = scmp.ne.s32.totalorder %s1523_s10, %s1519_s9  ;;  %p1596_p1 = scmp.eq.s32.totalorder %s1056_s15, 0 }
   0x9   : > { %p1600_p2 = scmp.eq.s32.totalorder %s1056_s15, 1  ;;  %p131_p3 = scmp.eq.s32.totalorder %s1057_s16, 1 }
   0xa   : > { %p1606_p4 = por %p1596_p1, %p97_p0  ;;  %p1058_p5 = scmp.ge.s32.totalorder %s1539_s14, 1 }
   0xb   : > { %p1611_p6 = por %p131_p3, %p97_p0  ;;  %p138_p7 = scmp.lt.s32.totalorder %s1539_s14, 3 }
   0xc   : > { %s155_s23 = sshll.u32 %s1822_s0, 4  ;;  %s1541_s25 = smov [#allocation3]   ;;  %s156_s23 = int_to_ptr.hbm [resolvable:$true] %s155_s23 }
   0xd   : > { %p1619_p8 = pnand %p1058_p5, %p138_p7  ;;  %s157_s26 = sshll.u32 %s1541_s25, 4  ;;  %s158_s26 = int_to_ptr.vmem [resolvable:$true] %s157_s26 }
   0xe   : > { %p1060_p11 = scmp.ge.s32.totalorder %s1539_s14, 2  ;;  %s1542_s27 = smov 128  }
   0xf   : > { %p1323_p9 = pneg %p1619_p8  ;;  %s1543_s28 = smov 8  }
  0x10   : > { %s45_s29 = sadd.s32 1, %s1535_s13  ;;  %s84_s30 = sadd.s32 1, %s1527_s11 }
  0x11   : > { %p1324_p10 = pnand %p1323_p9, %p1596_p1  ;;  %p47_p12 = scmp.ge.s32.totalorder %s45_s29, 2 }
  0x12   : > { %p91_p13 = scmp.ne.s32.totalorder %s1527_s11, %s1523_s10  ;;  %p92_p0 = scmp.eq.s32.totalorder %s1539_s14, 0 }
  0x13   : > { %1326 = dma.hbm_to_vmem [thread:$0]  (!%p1324_p10), %s156_s23, 2048, %s158_s26, [#allocation4], %s1542_s27, %s1542_s27, %s1543_s28  }
  0x14   : > { %s1838_s29 = smov (%p47_p12, %s45_s29), 0  ;;  %p1638_p3 = por %p92_p0, %p91_p13 }
  0x15   : > { %p1644_p5 = por %p1600_p2, %p91_p13  ;;  %s77_s5 = ssub.s32 %s1535_s13, %s1838_s29 }
  0x16   : > { %p1336_p7 = scmp.lt.s32.totalorder %s1539_s14, 2  ;;  %p82_p9 = scmp.eq.s32.totalorder %s77_s5, 0 }
  0x17   : > { %s171_s6 = sand.u32 1, %s1527_s11   ;;  %s1265_s15 = sshll.u32 %s1535_s13, 8 }
  0x18   : > { %s1061_s7 = sshll.u32 %s171_s6, 8  ;;  %s185_s22 = scalar_lea.hbm %s1823_s1, %s1265_s15 }
  0x19   : > { %s1653_s8 = scalar_select %p82_p9, %s1527_s11, %s84_s30  }
  0x1a   : > { %s175_s23 = scalar_lea.vmem [#allocation6], %s1061_s7  ;;  %s186_s18 = sshll.u32 %s185_s22, 4  ;;  %s187_s18 = int_to_ptr.hbm [resolvable:$true] %s186_s18 }
  0x1b   : > { %s188_s25 = sshll.u32 %s175_s23, 4  ;;  %p1328_p2 = pnand %p1336_p7, %p1638_p3  ;;  %s189_s25 = int_to_ptr.vmem [resolvable:$true] %s188_s25 }
  0x1c   : > { %s172_s26 = scalar_lea.sflag [#allocation7], %s171_s6  ;;  %200 = sbr.rel (%p1619_p8) target bundleno = 334 (0x14e), region = 28 }
  0x1d   : > { %1330 = dma.hbm_to_vmem [thread:$0]  (!%p1328_p2), %s187_s18, 4096, %s189_s25, %s172_s26, %s1542_s27, %s1542_s27, %s1543_s28  }
  0x21   : > { %1506 = dma.done.wait (%p1596_p1), [#allocation4], 2048  }
  0x22   : > { %1508 = vsyncadd (%p1596_p1), [#allocation4], 4294965248  ;;  %s1671_s30 = sand.u32 1, %s1523_s10  }
  0x23   : > { %s1066_s3 = sshll.u32 %s1671_s30, 8  ;;  %s208_s5 = scalar_lea.sflag [#allocation7], %s1671_s30 }
  0x24   : > { %s1677_s27 = scalar_lea.vmem [#allocation6], %s1066_s3 }
  0x25   : > { %1510 = dma.done.wait (%p1606_p4), %s208_s5, 4096  }
  0x26   : > { %1512 = vsyncadd (%p1606_p4), %s208_s5, 4294963200  ;;  %v1190_v0 = vld [vmem:[%s1677_s27 + $0x70] sm:$0xf]  ;;  %v1297_v1 = vld [vmem:[%s1677_s27 + $0x74] sm:$0xf0]  ;;  %s1749_s17 = scalar_lea.vmem [#allocation8], %s1066_s3 }
  0x27   : > { %v1254_v2 = vld [vmem:[%s1677_s27 + $0xf0] sm:$0xf]  ;;  %v1191_v3 = vor.u32 %v1297_v1, %v1190_v0  ;;  %v1313_v4 = vld [vmem:[%s1677_s27 + $0xf4] sm:$0xf0]  ;;  %v1296_v5 = vld [vmem:[%s1677_s27 + $0x74] sm:$0xf] }
  0x28   : > { %v1192_v6 = vld [vmem:[%s1677_s27 + $0x78] sm:$0xf0]  ;;  %v1255_v7 = vor.u32 %v1313_v4, %v1254_v2  ;;  %v1312_v9 = vld [vmem:[%s1677_s27 + $0xf4] sm:$0xf]  ;;  %v1182_v11 = vld [vmem:[%s1677_s27 + $0x60] sm:$0xf] }
  0x29   : > { %v1195_v8 = vor.u32 %v1296_v5, %v1192_v6  ;;  %v1256_v10 = vld [vmem:[%s1677_s27 + $0xf8] sm:$0xf0]  ;;  %596 = vmatpush.bf16.msra.mxu0 %v1191_v3  ;;  %v1295_v13 = vld [vmem:[%s1677_s27 + $0x64] sm:$0xf0]  ;;  %v1246_v14 = vld [vmem:[%s1677_s27 + $0xe0] sm:$0xf] }
  0x2a   : > { %v1259_v12 = vor.u32 %v1312_v9, %v1256_v10  ;;  %v1311_v15 = vld [vmem:[%s1677_s27 + $0xe4] sm:$0xf0]  ;;  %645 = vmatpush.bf16.msra.mxu1 %v1255_v7  ;;  %v1183_v16 = vor.u32 %v1295_v13, %v1182_v11  ;;  %v1294_v18 = vld [vmem:[%s1677_s27 + $0x64] sm:$0xf]  ;;  %v1184_v19 = vld [vmem:[%s1677_s27 + $0x68] sm:$0xf0] }
  0x2b   : > { %694 = vmatpush.bf16.msra.mxu2 %v1195_v8  ;;  %v1247_v17 = vor.u32 %v1311_v15, %v1246_v14  ;;  %v1310_v20 = vld [vmem:[%s1677_s27 + $0xe4] sm:$0xf]  ;;  %v1187_v21 = vor.u32 %v1294_v18, %v1184_v19  ;;  %v1248_v22 = vld [vmem:[%s1677_s27 + $0xe8] sm:$0xf0]  ;;  %v1174_v23 = vld [vmem:[%s1677_s27 + $0x50] sm:$0xf] }
  0x2c   : > { %743 = vmatpush.bf16.msra.mxu3 %v1259_v12  ;;  %v1293_v24 = vld [vmem:[%s1677_s27 + $0x54] sm:$0xf0]  ;;  %v1251_v25 = vor.u32 %v1310_v20, %v1248_v22  ;;  %v1238_v26 = vld [vmem:[%s1677_s27 + $0xd0] sm:$0xf]  ;;  %v1292_v28 = vld [vmem:[%s1677_s27 + $0x54] sm:$0xf] }
  0x2d   : > { %v1309_v27 = vld [vmem:[%s1677_s27 + $0xd4] sm:$0xf0]  ;;  %597 = vmatpush.bf16.msra.mxu0 %v1183_v16  ;;  %v1175_v29 = vor.u32 %v1293_v24, %v1174_v23  ;;  %v1176_v30 = vld [vmem:[%s1677_s27 + $0x58] sm:$0xf0]  ;;  %v1308_v31 = vld [vmem:[%s1677_s27 + $0xd4] sm:$0xf] }
  0x2e   : > { %v1240_v32 = vld [vmem:[%s1677_s27 + $0xd8] sm:$0xf0]  ;;  %646 = vmatpush.bf16.msra.mxu1 %v1247_v17  ;;  %v1239_v33 = vor.u32 %v1309_v27, %v1238_v26  ;;  %v1179_v34 = vor.u32 %v1292_v28, %v1176_v30  ;;  %v1166_v35 = vld [vmem:[%s1677_s27 + $0x40] sm:$0xf]  ;;  %v1291_v36 = vld [vmem:[%s1677_s27 + $0x44] sm:$0xf0] }
  0x2f   : > { %695 = vmatpush.bf16.msra.mxu2 %v1187_v21  ;;  %v1230_v37 = vld [vmem:[%s1677_s27 + $0xc0] sm:$0xf]  ;;  %v1243_v38 = vor.u32 %v1308_v31, %v1240_v32  ;;  %v1307_v39 = vld [vmem:[%s1677_s27 + $0xc4] sm:$0xf0]  ;;  %v1290_v40 = vld [vmem:[%s1677_s27 + $0x44] sm:$0xf]  ;;  %v1167_v44 = vor.u32 %v1291_v36, %v1166_v35 }
  0x30   : > { %744 = vmatpush.bf16.msra.mxu3 %v1251_v25  ;;  %v1168_v41 = vld [vmem:[%s1677_s27 + $0x48] sm:$0xf0]  ;;  %v1306_v42 = vld [vmem:[%s1677_s27 + $0xc4] sm:$0xf]  ;;  %v1231_v45 = vor.u32 %v1307_v39, %v1230_v37  ;;  %v1158_v47 = vld [vmem:[%s1677_s27 + $0x30] sm:$0xf] }
  0x31   : > { %v1232_v43 = vld [vmem:[%s1677_s27 + $0xc8] sm:$0xf0]  ;;  %598 = vmatpush.bf16.msra.mxu0 %v1175_v29  ;;  %v1171_v46 = vor.u32 %v1290_v40, %v1168_v41  ;;  %v1289_v48 = vld [vmem:[%s1677_s27 + $0x34] sm:$0xf0]  ;;  %v1222_v49 = vld [vmem:[%s1677_s27 + $0xb0] sm:$0xf] }
  0x32   : > { %647 = vmatpush.bf16.msra.mxu1 %v1239_v33  ;;  %v1235_v50 = vor.u32 %v1306_v42, %v1232_v43  ;;  %v1305_v51 = vld [vmem:[%s1677_s27 + $0xb4] sm:$0xf0]  ;;  %v1288_v52 = vld [vmem:[%s1677_s27 + $0x34] sm:$0xf]  ;;  %v1160_v53 = vld [vmem:[%s1677_s27 + $0x38] sm:$0xf0]  ;;  %v1159_v56 = vor.u32 %v1289_v48, %v1158_v47 }
  0x33   : > { %696 = vmatpush.bf16.msra.mxu2 %v1179_v34  ;;  %v1304_v54 = vld [vmem:[%s1677_s27 + $0xb4] sm:$0xf]  ;;  %v1224_v55 = vld [vmem:[%s1677_s27 + $0xb8] sm:$0xf0]  ;;  %v1223_v57 = vor.u32 %v1305_v51, %v1222_v49  ;;  %v1163_v58 = vor.u32 %v1288_v52, %v1160_v53  ;;  %v1150_v59 = vld [vmem:[%s1677_s27 + $0x20] sm:$0xf] }
  0x34   : > { %745 = vmatpush.bf16.msra.mxu3 %v1243_v38  ;;  %v1287_v60 = vld [vmem:[%s1677_s27 + $0x24] sm:$0xf0]  ;;  %v1214_v61 = vld [vmem:[%s1677_s27 + $0xa0] sm:$0xf]  ;;  %v1227_v62 = vor.u32 %v1304_v54, %v1224_v55  ;;  %v1286_v0 = vld [vmem:[%s1677_s27 + $0x24] sm:$0xf] }
  0x35   : > { %599 = vmatpush.bf16.msra.mxu0 %v1167_v44  ;;  %v1303_v63 = vld [vmem:[%s1677_s27 + $0xa4] sm:$0xf0]  ;;  %v1152_v1 = vld [vmem:[%s1677_s27 + $0x28] sm:$0xf0]  ;;  %v1302_v2 = vld [vmem:[%s1677_s27 + $0xa4] sm:$0xf]  ;;  %v1151_v4 = vor.u32 %v1287_v60, %v1150_v59 }
  0x36   : > { %648 = vmatpush.bf16.msra.mxu1 %v1231_v45  ;;  %v1216_v3 = vld [vmem:[%s1677_s27 + $0xa8] sm:$0xf0]  ;;  %v1215_v5 = vor.u32 %v1303_v63, %v1214_v61  ;;  %v1155_v6 = vor.u32 %v1286_v0, %v1152_v1  ;;  %v1142_v7 = vld [vmem:[%s1677_s27 + $0x10] sm:$0xf]  ;;  %v1285_v8 = vld [vmem:[%s1677_s27 + $0x14] sm:$0xf0] }
  0x37   : > { %697 = vmatpush.bf16.msra.mxu2 %v1171_v46  ;;  %v1206_v9 = vld [vmem:[%s1677_s27 + $0x90] sm:$0xf]  ;;  %v1219_v10 = vor.u32 %v1302_v2, %v1216_v3  ;;  %v1301_v11 = vld [vmem:[%s1677_s27 + $0x94] sm:$0xf0]  ;;  %v1284_v12 = vld [vmem:[%s1677_s27 + $0x14] sm:$0xf]  ;;  %v1143_v16 = vor.u32 %v1285_v8, %v1142_v7 }
  0x38   : > { %746 = vmatpush.bf16.msra.mxu3 %v1235_v50  ;;  %v1144_v13 = vld [vmem:[%s1677_s27 + $0x18] sm:$0xf0]  ;;  %v1300_v14 = vld [vmem:[%s1677_s27 + $0x94] sm:$0xf]  ;;  %v1207_v17 = vor.u32 %v1301_v11, %v1206_v9  ;;  %v1134_v19 = vld [vmem:[%s1677_s27] sm:$0xf] }
  0x39   : > { %600 = vmatpush.bf16.msra.mxu0 %v1159_v56  ;;  %v1208_v15 = vld [vmem:[%s1677_s27 + $0x98] sm:$0xf0]  ;;  %v1147_v18 = vor.u32 %v1284_v12, %v1144_v13  ;;  %v1283_v20 = vld [vmem:[%s1677_s27 + $0x4] sm:$0xf0]  ;;  %v1198_v21 = vld [vmem:[%s1677_s27 + $0x80] sm:$0xf] }
  0x3a   : > { %649 = vmatpush.bf16.msra.mxu1 %v1223_v57  ;;  %v1211_v22 = vor.u32 %v1300_v14, %v1208_v15  ;;  %v1299_v23 = vld [vmem:[%s1677_s27 + $0x84] sm:$0xf0]  ;;  %v1282_v24 = vld [vmem:[%s1677_s27 + $0x4] sm:$0xf]  ;;  %v1136_v25 = vld [vmem:[%s1677_s27 + $0x8] sm:$0xf0]  ;;  %v1135_v28 = vor.u32 %v1283_v20, %v1134_v19 }
  0x3b   : > { %698 = vmatpush.bf16.msra.mxu2 %v1163_v58  ;;  %v1298_v26 = vld [vmem:[%s1677_s27 + $0x84] sm:$0xf]  ;;  %v1200_v27 = vld [vmem:[%s1677_s27 + $0x88] sm:$0xf0]  ;;  %v1070_v29 = vld [vmem:[#allocation3] sm:$0xf]  ;;  %v1199_v31 = vor.u32 %v1299_v23, %v1198_v21  ;;  %v1139_v32 = vor.u32 %v1282_v24, %v1136_v25 }
  0x3c   : > { %747 = vmatpush.bf16.msra.mxu3 %v1227_v62  ;;  %v1267_v30 = vld [vmem:[#allocation3 + $0x4] sm:$0xf0]  ;;  %v1266_v33 = vld [vmem:[#allocation3 + $0x4] sm:$0xf]  ;;  %v1072_v34 = vld [vmem:[#allocation3 + $0x8] sm:$0xf0]  ;;  %v1203_v35 = vor.u32 %v1298_v26, %v1200_v27 }
  0x3d   : > { %601 = vmatpush.bf16.msra.mxu0 %v1151_v4  ;;  %v1071_v36 = vor.u32 %v1267_v30, %v1070_v29  ;;  %v1075_v37 = vor.u32 %v1266_v33, %v1072_v34  ;;  %v1078_v38 = vld [vmem:[#allocation3 + $0x10] sm:$0xf]  ;;  %v1269_v39 = vld [vmem:[#allocation3 + $0x14] sm:$0xf0]  ;;  %v1268_v40 = vld [vmem:[#allocation3 + $0x14] sm:$0xf] }
  0x3e   : > { %650 = vmatpush.bf16.msra.mxu1 %v1215_v5  ;;  %v1080_v41 = vld [vmem:[#allocation3 + $0x18] sm:$0xf0]  ;;  %v1079_v42 = vor.u32 %v1269_v39, %v1078_v38  ;;  %v1086_v44 = vld [vmem:[#allocation3 + $0x20] sm:$0xf]  ;;  %v1271_v45 = vld [vmem:[#allocation3 + $0x24] sm:$0xf0] }
  0x3f   : > { %699 = vmatpush.bf16.msra.mxu2 %v1155_v6  ;;  %v1083_v43 = vor.u32 %v1268_v40, %v1080_v41  ;;  %v1270_v46 = vld [vmem:[#allocation3 + $0x24] sm:$0xf]  ;;  %v1088_v47 = vld [vmem:[#allocation3 + $0x28] sm:$0xf0]  ;;  %v1087_v48 = vor.u32 %v1271_v45, %v1086_v44  ;;  %v1094_v50 = vld [vmem:[#allocation3 + $0x30] sm:$0xf] }
  0x40   : > { %748 = vmatpush.bf16.msra.mxu3 %v1219_v10  ;;  %v1091_v49 = vor.u32 %v1270_v46, %v1088_v47  ;;  %v1273_v51 = vld [vmem:[#allocation3 + $0x34] sm:$0xf0]  ;;  %v1272_v52 = vld [vmem:[#allocation3 + $0x34] sm:$0xf]  ;;  %v1096_v53 = vld [vmem:[#allocation3 + $0x38] sm:$0xf0] }
  0x41   : > { %602 = vmatpush.bf16.msra.mxu0 %v1143_v16  ;;  %v1095_v54 = vor.u32 %v1273_v51, %v1094_v50  ;;  %v1099_v55 = vor.u32 %v1272_v52, %v1096_v53  ;;  %v1102_v56 = vld [vmem:[#allocation3 + $0x40] sm:$0xf]  ;;  %v1275_v57 = vld [vmem:[#allocation3 + $0x44] sm:$0xf0]  ;;  %v1274_v58 = vld [vmem:[#allocation3 + $0x44] sm:$0xf] }
  0x42   : > { %651 = vmatpush.bf16.msra.mxu1 %v1207_v17  ;;  %v1104_v59 = vld [vmem:[#allocation3 + $0x48] sm:$0xf0]  ;;  %v1103_v60 = vor.u32 %v1275_v57, %v1102_v56  ;;  %v1110_v62 = vld [vmem:[#allocation3 + $0x50] sm:$0xf]  ;;  %v1277_v63 = vld [vmem:[#allocation3 + $0x54] sm:$0xf0] }
  0x43   : > { %700 = vmatpush.bf16.msra.mxu2 %v1147_v18  ;;  %v1107_v61 = vor.u32 %v1274_v58, %v1104_v59  ;;  %v1276_v0 = vld [vmem:[#allocation3 + $0x54] sm:$0xf]  ;;  %v1112_v1 = vld [vmem:[#allocation3 + $0x58] sm:$0xf0]  ;;  %v1111_v2 = vor.u32 %v1277_v63, %v1110_v62  ;;  %v1118_v4 = vld [vmem:[#allocation3 + $0x60] sm:$0xf] }
  0x44   : > { %749 = vmatpush.bf16.msra.mxu3 %v1211_v22  ;;  %v1115_v3 = vor.u32 %v1276_v0, %v1112_v1  ;;  %v1279_v5 = vld [vmem:[#allocation3 + $0x64] sm:$0xf0]  ;;  %v1278_v6 = vld [vmem:[#allocation3 + $0x64] sm:$0xf]  ;;  %v1120_v7 = vld [vmem:[#allocation3 + $0x68] sm:$0xf0] }
  0x45   : > { %603 = vmatpush.bf16.msra.mxu0 %v1135_v28  ;;  %v1119_v8 = vor.u32 %v1279_v5, %v1118_v4  ;;  %v1123_v9 = vor.u32 %v1278_v6, %v1120_v7  ;;  %v1126_v10 = vld [vmem:[#allocation3 + $0x70] sm:$0xf]  ;;  %v1281_v11 = vld [vmem:[#allocation3 + $0x74] sm:$0xf0]  ;;  %v1280_v12 = vld [vmem:[#allocation3 + $0x74] sm:$0xf] }
  0x46   : > { %652 = vmatpush.bf16.msra.mxu1 %v1199_v31  ;;  %v1128_v13 = vld [vmem:[#allocation3 + $0x78] sm:$0xf0]  ;;  %v1127_v14 = vor.u32 %v1281_v11, %v1126_v10  ;;  %s1314_s19 = sshll.u32 %s1531_s12, 4  ;;  %s940_s7 = sshll.u32 %s1749_s17, 4  ;;  %s941_s7 = int_to_ptr.vmem [resolvable:$true] %s940_s7 }
  0x47   : > { %701 = vmatpush.bf16.msra.mxu2 %v1139_v32  ;;  %v1131_v15 = vor.u32 %v1280_v12, %v1128_v13  ;;  %s939_s6 = scalar_lea.hbm %s1824_s2, %s1314_s19  ;;  %s924_s12 = scalar_lea.sflag [#allocation5], %s1671_s30 }
  0x48   : > { %750 = vmatpush.bf16.msra.mxu3 %v1203_v35  ;;  %604 = vmatmul.bf16.vlgmr.msra.gmra.mxu0 %v1071_v36  ;;  %s942_s15 = sshll.u32 %s939_s6, 4  ;;  %s1473_s25 = scalar_lea.hbm %s1824_s2, 512  ;;  %s943_s15 = int_to_ptr.hbm [resolvable:$true] %s942_s15 }
  0x49   : > { %653 = vmatmul.bf16.vlgmr.msra.gmra.mxu1 %v1075_v37  ;;  %s1467_s16 = sshra.s32 %s943_s15, 4  ;;  %s1468_s16 = int_to_ptr.hbm [resolvable:$true] %s1467_s16 }
  0x4a   : > { %702 = vmatmul.bf16.vlgmr.msra.gmra.mxu2 %v1071_v36  ;;  %s1469_s21 = scalar_lea.hbm %s1468_s16, 256  ;;  %p1474_p10 = scmp.lt.s32.totalorder %s1468_s16, %s1824_s2 }
  0x4b   : > { %751 = vmatmul.bf16.vlgmr.msra.gmra.mxu3 %v1075_v37  ;;  %p1470_p1 = scmp.ne.s32.totalorder %s1468_s16, %s1469_s21  ;;  %p1475_p12 = scmp.lt.s32.totalorder %s1473_s25, %s1469_s21 }
  0x4d   : > { %p1471_p4 = pnand %p1470_p1, %p1644_p5  ;;  %p1476_p13 = por %p1475_p12, %p1474_p10 }
  0x4f   : > { %p1472_p8 = pneg %p1471_p4 }
  0x51   : > { %p1477_p0 = pnand %p1476_p13, %p1472_p8 }
  0x58   : > { %609 = vmatmul.bf16.gmra.mxu0 %v1079_v42 }
  0x59   : > { %658 = vmatmul.bf16.gmra.mxu1 %v1083_v43 }
  0x5a   : > { %707 = vmatmul.bf16.gmra.mxu2 %v1079_v42 }
  0x5b   : > { %756 = vmatmul.bf16.gmra.mxu3 %v1083_v43 }
  0x68   : > { %614 = vmatmul.bf16.gmra.mxu0 %v1087_v48 }
  0x69   : > { %663 = vmatmul.bf16.gmra.mxu1 %v1091_v49 }
  0x6a   : > { %712 = vmatmul.bf16.gmra.mxu2 %v1087_v48 }
  0x6b   : > { %761 = vmatmul.bf16.gmra.mxu3 %v1091_v49 }
  0x78   : > { %619 = vmatmul.bf16.gmra.mxu0 %v1095_v54 }
  0x79   : > { %668 = vmatmul.bf16.gmra.mxu1 %v1099_v55 }
  0x7a   : > { %717 = vmatmul.bf16.gmra.mxu2 %v1095_v54 }
  0x7b   : > { %766 = vmatmul.bf16.gmra.mxu3 %v1099_v55 }
  0x88   : > { %624 = vmatmul.bf16.gmra.mxu0 %v1103_v60 }
  0x89   : > { %673 = vmatmul.bf16.gmra.mxu1 %v1107_v61 }
  0x8a   : > { %722 = vmatmul.bf16.gmra.mxu2 %v1103_v60 }
  0x8b   : > { %771 = vmatmul.bf16.gmra.mxu3 %v1107_v61 }
  0x98   : > { %629 = vmatmul.bf16.gmra.mxu0 %v1111_v2 }
  0x99   : > { %678 = vmatmul.bf16.gmra.mxu1 %v1115_v3 }
  0x9a   : > { %727 = vmatmul.bf16.gmra.mxu2 %v1111_v2 }
  0x9b   : > { %776 = vmatmul.bf16.gmra.mxu3 %v1115_v3 }
  0xa8   : > { %634 = vmatmul.bf16.gmra.mxu0 %v1119_v8 }
  0xa9   : > { %683 = vmatmul.bf16.gmra.mxu1 %v1123_v9 }
  0xaa   : > { %732 = vmatmul.bf16.gmra.mxu2 %v1119_v8 }
  0xab   : > { %781 = vmatmul.bf16.gmra.mxu3 %v1123_v9 }
  0xb8   : > { %639 = vmatmul.bf16.gmra.mxu0 %v1127_v14 }
  0xb9   : > { %688 = vmatmul.bf16.gmra.mxu1 %v1131_v15 }
  0xba   : > { %737 = vmatmul.bf16.gmra.mxu2 %v1127_v14 }
  0xbb   : > { %786 = vmatmul.bf16.gmra.mxu3 %v1131_v15 }
  0xc5   : > { %v605_v16 = vpop.f32.mrf.mxu0 }
  0xc6   : > { %v654_v17 = vpop.f32.mrf.mxu1 }
  0xc7   : > { %v655_v18 = vadd.f32 %v654_v17, %v605_v16 }
  0xc9   : > { %891 = vst [vmem:[%s1749_s17] sm:$0xff] %v655_v18 }
  0xcd   : > { %v703_v19 = vpop.f32.mrf.mxu2  ;;  %v607_v21 = vpop.f32.mrf.mxu0 }
  0xce   : > { %v752_v20 = vpop.f32.mrf.mxu3  ;;  %v656_v23 = vpop.f32.mrf.mxu1 }
  0xcf   : > { %v753_v22 = vadd.f32 %v752_v20, %v703_v19  ;;  %v657_v24 = vadd.f32 %v656_v23, %v607_v21 }
  0xd1   : > { %892 = vst [vmem:[%s1749_s17 + $0x8] sm:$0xff] %v753_v22 }
  0xd2   : > { %893 = vst [vmem:[%s1749_s17 + $0x10] sm:$0xff] %v657_v24 }
  0xd5   : > { %v705_v25 = vpop.f32.mrf.mxu2  ;;  %v610_v27 = vpop.f32.mrf.mxu0 }
  0xd6   : > { %v754_v26 = vpop.f32.mrf.mxu3  ;;  %v659_v29 = vpop.f32.mrf.mxu1 }
  0xd7   : > { %v755_v28 = vadd.f32 %v754_v26, %v705_v25  ;;  %v660_v30 = vadd.f32 %v659_v29, %v610_v27 }
  0xd9   : > { %894 = vst [vmem:[%s1749_s17 + $0x18] sm:$0xff] %v755_v28 }
  0xda   : > { %895 = vst [vmem:[%s1749_s17 + $0x20] sm:$0xff] %v660_v30 }
  0xdd   : > { %v708_v31 = vpop.f32.mrf.mxu2  ;;  %v612_v33 = vpop.f32.mrf.mxu0 }
  0xde   : > { %v757_v32 = vpop.f32.mrf.mxu3  ;;  %v661_v35 = vpop.f32.mrf.mxu1 }
  0xdf   : > { %v758_v34 = vadd.f32 %v757_v32, %v708_v31  ;;  %v662_v36 = vadd.f32 %v661_v35, %v612_v33 }
  0xe1   : > { %896 = vst [vmem:[%s1749_s17 + $0x28] sm:$0xff] %v758_v34 }
  0xe2   : > { %897 = vst [vmem:[%s1749_s17 + $0x30] sm:$0xff] %v662_v36 }
  0xe5   : > { %v710_v37 = vpop.f32.mrf.mxu2  ;;  %v615_v39 = vpop.f32.mrf.mxu0 }
  0xe6   : > { %v759_v38 = vpop.f32.mrf.mxu3  ;;  %v664_v41 = vpop.f32.mrf.mxu1 }
  0xe7   : > { %v760_v40 = vadd.f32 %v759_v38, %v710_v37  ;;  %v665_v42 = vadd.f32 %v664_v41, %v615_v39 }
  0xe9   : > { %898 = vst [vmem:[%s1749_s17 + $0x38] sm:$0xff] %v760_v40 }
  0xea   : > { %899 = vst [vmem:[%s1749_s17 + $0x40] sm:$0xff] %v665_v42 }
  0xed   : > { %v713_v43 = vpop.f32.mrf.mxu2  ;;  %v617_v45 = vpop.f32.mrf.mxu0 }
  0xee   : > { %v762_v44 = vpop.f32.mrf.mxu3  ;;  %v666_v47 = vpop.f32.mrf.mxu1 }
  0xef   : > { %v763_v46 = vadd.f32 %v762_v44, %v713_v43  ;;  %v667_v48 = vadd.f32 %v666_v47, %v617_v45 }
  0xf1   : > { %900 = vst [vmem:[%s1749_s17 + $0x48] sm:$0xff] %v763_v46 }
  0xf2   : > { %901 = vst [vmem:[%s1749_s17 + $0x50] sm:$0xff] %v667_v48 }
  0xf5   : > { %v715_v49 = vpop.f32.mrf.mxu2  ;;  %v620_v51 = vpop.f32.mrf.mxu0 }
  0xf6   : > { %v764_v50 = vpop.f32.mrf.mxu3  ;;  %v669_v53 = vpop.f32.mrf.mxu1 }
  0xf7   : > { %v765_v52 = vadd.f32 %v764_v50, %v715_v49  ;;  %v670_v54 = vadd.f32 %v669_v53, %v620_v51 }
  0xf9   : > { %902 = vst [vmem:[%s1749_s17 + $0x58] sm:$0xff] %v765_v52 }
  0xfa   : > { %903 = vst [vmem:[%s1749_s17 + $0x60] sm:$0xff] %v670_v54 }
  0xfd   : > { %v718_v55 = vpop.f32.mrf.mxu2  ;;  %v622_v57 = vpop.f32.mrf.mxu0 }
  0xfe   : > { %v767_v56 = vpop.f32.mrf.mxu3  ;;  %v671_v59 = vpop.f32.mrf.mxu1 }
  0xff   : > { %v768_v58 = vadd.f32 %v767_v56, %v718_v55  ;;  %v672_v60 = vadd.f32 %v671_v59, %v622_v57 }
 0x101   : > { %904 = vst [vmem:[%s1749_s17 + $0x68] sm:$0xff] %v768_v58 }
 0x102   : > { %905 = vst [vmem:[%s1749_s17 + $0x70] sm:$0xff] %v672_v60 }
 0x105   : > { %v720_v61 = vpop.f32.mrf.mxu2  ;;  %v625_v63 = vpop.f32.mrf.mxu0 }
 0x106   : > { %v769_v62 = vpop.f32.mrf.mxu3  ;;  %v674_v1 = vpop.f32.mrf.mxu1 }
 0x107   : > { %v770_v0 = vadd.f32 %v769_v62, %v720_v61  ;;  %v675_v2 = vadd.f32 %v674_v1, %v625_v63 }
 0x109   : > { %906 = vst [vmem:[%s1749_s17 + $0x78] sm:$0xff] %v770_v0 }
 0x10a   : > { %907 = vst [vmem:[%s1749_s17 + $0x80] sm:$0xff] %v675_v2 }
 0x10d   : > { %v723_v3 = vpop.f32.mrf.mxu2  ;;  %v627_v5 = vpop.f32.mrf.mxu0 }
 0x10e   : > { %v772_v4 = vpop.f32.mrf.mxu3  ;;  %v676_v7 = vpop.f32.mrf.mxu1 }
 0x10f   : > { %v773_v6 = vadd.f32 %v772_v4, %v723_v3  ;;  %v677_v8 = vadd.f32 %v676_v7, %v627_v5 }
 0x111   : > { %908 = vst [vmem:[%s1749_s17 + $0x88] sm:$0xff] %v773_v6 }
 0x112   : > { %909 = vst [vmem:[%s1749_s17 + $0x90] sm:$0xff] %v677_v8 }
 0x115   : > { %v725_v9 = vpop.f32.mrf.mxu2  ;;  %v630_v11 = vpop.f32.mrf.mxu0 }
 0x116   : > { %v774_v10 = vpop.f32.mrf.mxu3  ;;  %v679_v13 = vpop.f32.mrf.mxu1 }
 0x117   : > { %v775_v12 = vadd.f32 %v774_v10, %v725_v9  ;;  %v680_v14 = vadd.f32 %v679_v13, %v630_v11 }
 0x119   : > { %910 = vst [vmem:[%s1749_s17 + $0x98] sm:$0xff] %v775_v12 }
 0x11a   : > { %911 = vst [vmem:[%s1749_s17 + $0xa0] sm:$0xff] %v680_v14 }
 0x11d   : > { %v728_v15 = vpop.f32.mrf.mxu2  ;;  %v632_v17 = vpop.f32.mrf.mxu0 }
 0x11e   : > { %v777_v16 = vpop.f32.mrf.mxu3  ;;  %v681_v19 = vpop.f32.mrf.mxu1 }
 0x11f   : > { %v778_v18 = vadd.f32 %v777_v16, %v728_v15  ;;  %v682_v20 = vadd.f32 %v681_v19, %v632_v17 }
 0x121   : > { %912 = vst [vmem:[%s1749_s17 + $0xa8] sm:$0xff] %v778_v18 }
 0x122   : > { %913 = vst [vmem:[%s1749_s17 + $0xb0] sm:$0xff] %v682_v20 }
 0x125   : > { %v730_v21 = vpop.f32.mrf.mxu2  ;;  %v635_v23 = vpop.f32.mrf.mxu0 }
 0x126   : > { %v779_v22 = vpop.f32.mrf.mxu3  ;;  %v684_v25 = vpop.f32.mrf.mxu1 }
 0x127   : > { %v780_v24 = vadd.f32 %v779_v22, %v730_v21  ;;  %v685_v26 = vadd.f32 %v684_v25, %v635_v23 }
 0x129   : > { %914 = vst [vmem:[%s1749_s17 + $0xb8] sm:$0xff] %v780_v24 }
 0x12a   : > { %915 = vst [vmem:[%s1749_s17 + $0xc0] sm:$0xff] %v685_v26 }
 0x12d   : > { %v733_v27 = vpop.f32.mrf.mxu2  ;;  %v637_v29 = vpop.f32.mrf.mxu0 }
 0x12e   : > { %v782_v28 = vpop.f32.mrf.mxu3  ;;  %v686_v31 = vpop.f32.mrf.mxu1 }
 0x12f   : > { %v783_v30 = vadd.f32 %v782_v28, %v733_v27  ;;  %v687_v32 = vadd.f32 %v686_v31, %v637_v29 }
 0x131   : > { %916 = vst [vmem:[%s1749_s17 + $0xc8] sm:$0xff] %v783_v30 }
 0x132   : > { %917 = vst [vmem:[%s1749_s17 + $0xd0] sm:$0xff] %v687_v32 }
 0x135   : > { %v735_v33 = vpop.f32.mrf.mxu2  ;;  %v640_v35 = vpop.f32.mrf.mxu0 }
 0x136   : > { %v784_v34 = vpop.f32.mrf.mxu3  ;;  %v689_v37 = vpop.f32.mrf.mxu1 }
 0x137   : > { %v785_v36 = vadd.f32 %v784_v34, %v735_v33  ;;  %v690_v38 = vadd.f32 %v689_v37, %v640_v35 }
 0x139   : > { %918 = vst [vmem:[%s1749_s17 + $0xd8] sm:$0xff] %v785_v36 }
 0x13a   : > { %919 = vst [vmem:[%s1749_s17 + $0xe0] sm:$0xff] %v690_v38 }
 0x13d   : > { %v738_v39 = vpop.f32.mrf.mxu2  ;;  %v642_v41 = vpop.f32.mrf.mxu0 }
 0x13e   : > { %v787_v40 = vpop.f32.mrf.mxu3  ;;  %v691_v43 = vpop.f32.mrf.mxu1 }
 0x13f   : > { %v788_v42 = vadd.f32 %v787_v40, %v738_v39  ;;  %v692_v44 = vadd.f32 %v691_v43, %v642_v41 }
 0x141   : > { %920 = vst [vmem:[%s1749_s17 + $0xe8] sm:$0xff] %v788_v42 }
 0x142   : > { %921 = vst [vmem:[%s1749_s17 + $0xf0] sm:$0xff] %v692_v44 }
 0x145   : > { %v740_v45 = vpop.f32.mrf.mxu2 }
 0x146   : > { %v789_v46 = vpop.f32.mrf.mxu3 }
 0x147   : > { %v790_v47 = vadd.f32 %v789_v46, %v740_v45 }
 0x149   : > { %922 = vst [vmem:[%s1749_s17 + $0xf8] sm:$0xff] %v790_v47 }
 0x14a   : > { %1480 = shalt.err (!%p1477_p0)
}
 0x14b   : > { %s1544_s30 = smov 256   ;;  %s1545_s3 = smov 512  }
 0x14c   : > { %s1546_s5 = smov 16  }
 0x14d   : > { %1321 = dma.vmem_to_hbm [thread:$0]  (%p1644_p5), %s941_s7, 4096, %s943_s15, %s924_s12, %s1544_s30, %s1545_s3, %s1546_s5  }
 0x14e PF: > { %s957_s27 = sand.u32 1, %s1519_s9   ;;  %p1332_p3 = pnand %p1060_p11, %p1611_p6 }
 0x14f   : > { %s958_s17 = scalar_lea.sflag [#allocation5], %s957_s27 }
 0x150   : > { %p1333_p7 = pneg %p1332_p3 }
 0x152   : > { %1514 = dma.done.wait (%p1333_p7), %s958_s17, 4096  }
 0x153   : > { %1516 = vsyncadd (%p1333_p7), %s958_s17, 4294963200  ;;  %s19_s14 = sadd.s32 1, %s1539_s14   ;;  %s1832_s9 = smov %s1523_s10 }
 0x154   : > { %p16_p9 = scmp.ge.s32.totalorder %s19_s14, 4   ;;  %s1833_s10 = smov %s1527_s11 }
 0x155   : > { %s1834_s11 = smov %s1653_s8  ;;  %s1835_s12 = smov %s1535_s13 }
 0x156   : > { %s1836_s13 = smov %s1838_s29  ;;  %18 = sbr.rel (!%p16_p9) target bundleno = 7 (0x7), region = 87 }
 0x15b   :  { %964 = vsyncpa [#allocation4], 1 }
 0x15c   :  { %966 = vsyncpa [#allocation4 + $0x1], 1 }
 0x15d   :  { %967 = vsyncpa [#allocation7], 1 }
 0x15e   :  { %969 = vsyncpa [#allocation7 + $0x1], 1 }
 0x15f   :  { %970 = vsyncpa [#allocation5], 1 }
 0x160   :  { %972 = vsyncpa [#allocation5 + $0x1], 1 }

</bundles_post_ra>
